<compile_context>
chip_gen: v7x
topology: tpu7x:2x2x1
jax: 0.10.0
libtpu: 0.0.40
codegen_flags: <defaults>
</compile_context>

<pallas_src>
import functools

import jax
import jax.numpy as jnp
from jax.experimental import pallas as pl
from jax.experimental.pallas import tpu as pltpu

EPS = 1e-5       # nn.BatchNorm1d default eps
LANE = 128       # TPU lane width: feature dims padded to multiples of this


def _round_up(n, m):
    return (n + m - 1) // m * m


def _pick_batch_tile(b):
    for t in (512, 256, 128):
        if b % t == 0:
            return t
    return b     # small batch: one tile holds the whole batch


# ---------------------------------------------------------------------------
# Kernel 1: per batch tile, z = relu(x@w1 + b1) @ w2 + b2  (bf16 MXU, f32 acc)
#           and accumulate global per-feature sum / sum-of-squares for BN.
# ---------------------------------------------------------------------------
def _linear_stats_kernel(x_ref, w1_ref, b1_ref, w2_ref, b2_ref,
                         z_ref, mean_ref, inv_ref,
                         sum_ref, sq_ref, *, batch_size):
    i = pl.program_id(0)

    @pl.when(i == 0)
    def _():
        sum_ref[...] = jnp.zeros_like(sum_ref)
        sq_ref[...] = jnp.zeros_like(sq_ref)

    # Hidden layer: bf16 operands -> MXU fast path, f32 accumulation.
    h = jnp.dot(x_ref[...].astype(jnp.bfloat16), w1_ref[...],
                preferred_element_type=jnp.float32)
    h = jnp.maximum(h + b1_ref[...], 0.0)

    # Output layer.
    z = jnp.dot(h.astype(jnp.bfloat16), w2_ref[...],
                preferred_element_type=jnp.float32)
    z = z + b2_ref[...]
    z_ref[...] = z                                   # lane-dense (OUT padded to 128)

    # Global BatchNorm statistics, accumulated across batch tiles.
    sum_ref[...] += jnp.sum(z, axis=0, keepdims=True)
    sq_ref[...] += jnp.sum(z * z, axis=0, keepdims=True)

    @pl.when(i == pl.num_programs(0) - 1)
    def _():
        mean = sum_ref[...] / batch_size
        var = sq_ref[...] / batch_size - mean * mean   # biased var (training mode)
        mean_ref[...] = mean
        inv_ref[...] = jax.lax.rsqrt(var + EPS)        # EUP slot, effectively free


# ---------------------------------------------------------------------------
# Kernel 2: y = relu(gamma * (z - mean) * inv_std + beta)     (pure VPU/EUP)
# ---------------------------------------------------------------------------
def _bn_relu_kernel(z_ref, mean_ref, inv_ref, gamma_ref, beta_ref, o_ref):
    z_hat = (z_ref[...] - mean_ref[...]) * inv_ref[...]
    o_ref[...] = jnp.maximum(gamma_ref[...] * z_hat + beta_ref[...], 0.0)


@jax.jit
def mlp_forward(x, w1, b1, w2, b2, gamma, beta):
    """x: (B, in) f32.  w1: (in, hidden), w2: (hidden, out) (pre-transposed vs torch).
    b1: (1, hidden); b2, gamma, beta: (1, out)."""
    B, IN = x.shape
    HID = w1.shape[1]
    OUT = w2.shape[1]

    IN_P = _round_up(IN, LANE)
    HID_P = _round_up(HID, LANE)
    OUT_P = _round_up(OUT, LANE)

    # Lane-dense zero padding of feature dims (done once, outside the kernels).
    # Padded columns stay exactly zero through both matmuls and BN (gamma=beta=0).
    x_p = jnp.pad(x, ((0, 0), (0, IN_P - IN)))
    w1_p = jnp.pad(w1, ((0, IN_P - IN), (0, HID_P - HID))).astype(jnp.bfloat16)
    b1_p = jnp.pad(b1, ((0, 0), (0, HID_P - HID)))
    w2_p = jnp.pad(w2, ((0, HID_P - HID), (0, OUT_P - OUT))).astype(jnp.bfloat16)
    b2_p = jnp.pad(b2, ((0, 0), (0, OUT_P - OUT)))
    gamma_p = jnp.pad(gamma, ((0, 0), (0, OUT_P - OUT)))
    beta_p = jnp.pad(beta, ((0, 0), (0, OUT_P - OUT)))

    tb = _pick_batch_tile(B)
    nbt = B // tb

    row = lambda n: pl.BlockSpec((1, n), lambda i: (0, 0))

    # Pass 1: linear layers + global BN statistics.
    z_pad, mean, inv_std = pl.pallas_call(
        functools.partial(_linear_stats_kernel, batch_size=float(B)),
        out_shape=(
            jax.ShapeDtypeStruct((B, OUT_P), jnp.float32),
            jax.ShapeDtypeStruct((1, OUT_P), jnp.float32),
            jax.ShapeDtypeStruct((1, OUT_P), jnp.float32),
        ),
        grid_spec=pltpu.PrefetchScalarGridSpec(
            num_scalar_prefetch=0,
            grid=(nbt,),
            in_specs=[
                pl.BlockSpec((tb, IN_P), lambda i: (i, 0)),
                pl.BlockSpec((IN_P, HID_P), lambda i: (0, 0)),   # weights resident
                row(HID_P),
                pl.BlockSpec((HID_P, OUT_P), lambda i: (0, 0)),
                row(OUT_P),
            ],
            out_specs=(
                pl.BlockSpec((tb, OUT_P), lambda i: (i, 0)),
                row(OUT_P),
                row(OUT_P),
            ),
            scratch_shapes=[pltpu.VMEM((1, OUT_P), jnp.float32),
                            pltpu.VMEM((1, OUT_P), jnp.float32)],
        ),
        compiler_params=pltpu.CompilerParams(
            dimension_semantics=("arbitrary",)),   # batch axis carries BN-stat accumulation
    )(x_p, w1_p, b1_p, w2_p, b2_p)

    # Pass 2: normalize + affine + ReLU (independent tiles -> parallel / both TCs).
    y_pad = pl.pallas_call(
        _bn_relu_kernel,
        out_shape=jax.ShapeDtypeStruct((B, OUT_P), jnp.float32),
        grid_spec=pltpu.PrefetchScalarGridSpec(
            num_scalar_prefetch=0,
            grid=(nbt,),
            in_specs=[
                pl.BlockSpec((tb, OUT_P), lambda i: (i, 0)),
                row(OUT_P), row(OUT_P), row(OUT_P), row(OUT_P),
            ],
            out_specs=pl.BlockSpec((tb, OUT_P), lambda i: (i, 0)),
        ),
        compiler_params=pltpu.CompilerParams(
            dimension_semantics=("parallel",)),
    )(z_pad, mean, inv_std, gamma_p, beta_p)

    # Dropout(p=0.0) and x.view(B, -1) are identities for a 2-D output.
    return y_pad[:, :OUT]


def init_params(key, in_size, hidden_size, out_size):
    """Mimics nn.Linear uniform(-1/sqrt(fan_in), ...) and BatchNorm1d (gamma=1, beta=0)."""
    k1, k2, k3, k4 = jax.random.split(key, 4)
    bound1 = 1.0 / jnp.sqrt(in_size)
    bound2 = 1.0 / jnp.sqrt(hidden_size)
    w1 = jax.random.uniform(k1, (in_size, hidden_size), jnp.float32, -bound1, bound1)
    b1 = jax.random.uniform(k2, (1, hidden_size), jnp.float32, -bound1, bound1)
    w2 = jax.random.uniform(k3, (hidden_size, out_size), jnp.float32, -bound2, bound2)
    b2 = jax.random.uniform(k4, (1, out_size), jnp.float32, -bound2, bound2)
    gamma = jnp.ones((1, out_size), jnp.float32)
    beta = jnp.zeros((1, out_size), jnp.float32)
    return w1, b1, w2, b2, gamma, beta


def mlp_reference_f32(x, w1, b1, w2, b2, gamma, beta):
    """Pure f32 reference = PyTorch module semantics (training-mode BatchNorm)."""
    h = jnp.maximum(x @ w1 + b1, 0.0)
    z = h @ w2 + b2
    mean = jnp.mean(z, axis=0, keepdims=True)
    var = jnp.mean((z - mean) ** 2, axis=0, keepdims=True)
    y = gamma * (z - mean) * jax.lax.rsqrt(var + EPS) + beta
    return jnp.maximum(y, 0.0)


def mlp_reference_bf16(x, w1, b1, w2, b2, gamma, beta):
    """Reference with the kernel's numerics (bf16 MXU operands, f32 acc/epilogue)."""
    h = jnp.dot(x.astype(jnp.bfloat16), w1.astype(jnp.bfloat16),
                preferred_element_type=jnp.float32)
    h = jnp.maximum(h + b1, 0.0)
    z = jnp.dot(h.astype(jnp.bfloat16), w2.astype(jnp.bfloat16),
                preferred_element_type=jnp.float32) + b2
    mean = jnp.mean(z, axis=0, keepdims=True)
    var = jnp.mean(z * z, axis=0, keepdims=True) - mean * mean
    y = gamma * ((z - mean) * jax.lax.rsqrt(var + EPS)) + beta
    return jnp.maximum(y, 0.0)


if __name__ == "__main__":
    # Small shapes consistent with the module: batch=8, in=16, hidden=32, out=16.
    B, IN, HID, OUT = 8, 16, 32, 16

    key = jax.random.PRNGKey(0)
    kx, kp = jax.random.split(key)
    x = jax.random.normal(kx, (B, IN), dtype=jnp.float32)
    params = init_params(kp, IN, HID, OUT)

    out = jax.block_until_ready(mlp_forward(x, *params))
    assert out.shape == (B, OUT)

    # Tight check vs. a reference with matched (bf16-MXU) numerics.
    ref_matched = mlp_reference_bf16(x, *params)
    assert jnp.allclose(out, ref_matched, atol=1e-3, rtol=1e-3), \
        "mismatch vs bf16-matched reference"

    # Loose check vs. the pure-f32 module-semantics reference
    # (difference is only bf16 rounding of the MXU operands).
    ref_f32 = mlp_reference_f32(x, *params)
    assert jnp.allclose(out, ref_f32, atol=1e-1, rtol=1e-1), \
        "mismatch vs f32 reference"

    # TODO(synk): running_mean / running_var buffer updates of nn.BatchNorm1d
    # (module training-state side effect) are not produced by this forward kernel.
    print("KERNEL_OK")
</pallas_src>

<mosaic_0001>
module attributes {stable_mosaic.version = 11 : i64} {
  func.func @_bn_relu_kernel(%arg0: i32, %arg1: memref<8x128xf32, #tpu.memory_space<vmem>>, %arg2: memref<1x128xf32, #tpu.memory_space<vmem>>, %arg3: memref<1x128xf32, #tpu.memory_space<vmem>>, %arg4: memref<1x128xf32, #tpu.memory_space<vmem>>, %arg5: memref<1x128xf32, #tpu.memory_space<vmem>>, %arg6: memref<8x128xf32, #tpu.memory_space<vmem>>) attributes {dimension_semantics = [#tpu.dimension_semantics<parallel>], iteration_bounds = array<i64: 1>, scalar_prefetch = 0 : i64, scratch_operands = 0 : i64, tpu.core_type = #tpu.core_type<tc>, window_params = [{transform_indices = @transform_0, window_bounds = array<i64: 8, 128>}, {pipeline_mode = #tpu.pipeline_mode<synchronous>, transform_indices = @transform_1, window_bounds = array<i64: 1, 128>}, {pipeline_mode = #tpu.pipeline_mode<synchronous>, transform_indices = @transform_2, window_bounds = array<i64: 1, 128>}, {pipeline_mode = #tpu.pipeline_mode<synchronous>, transform_indices = @transform_3, window_bounds = array<i64: 1, 128>}, {pipeline_mode = #tpu.pipeline_mode<synchronous>, transform_indices = @transform_4, window_bounds = array<i64: 1, 128>}, {transform_indices = @transform_5, window_bounds = array<i64: 8, 128>}]} {
    %c0 = arith.constant 0 : index
    %c0_0 = arith.constant 0 : index
    %0 = vector.load %arg1[%c0, %c0_0] : memref<8x128xf32, #tpu.memory_space<vmem>>, vector<8x128xf32>
    %c0_1 = arith.constant 0 : index
    %c0_2 = arith.constant 0 : index
    %1 = vector.load %arg2[%c0_1, %c0_2] : memref<1x128xf32, #tpu.memory_space<vmem>>, vector<1x128xf32>
    %2 = vector.broadcast %1 : vector<1x128xf32> to vector<8x128xf32>
    %3 = arith.subf %0, %2 : vector<8x128xf32>
    %c0_3 = arith.constant 0 : index
    %c0_4 = arith.constant 0 : index
    %4 = vector.load %arg3[%c0_3, %c0_4] : memref<1x128xf32, #tpu.memory_space<vmem>>, vector<1x128xf32>
    %5 = vector.broadcast %4 : vector<1x128xf32> to vector<8x128xf32>
    %6 = arith.mulf %3, %5 : vector<8x128xf32>
    %c0_5 = arith.constant 0 : index
    %c0_6 = arith.constant 0 : index
    %7 = vector.load %arg4[%c0_5, %c0_6] : memref<1x128xf32, #tpu.memory_space<vmem>>, vector<1x128xf32>
    %8 = vector.broadcast %7 : vector<1x128xf32> to vector<8x128xf32>
    %9 = arith.mulf %8, %6 : vector<8x128xf32>
    %c0_7 = arith.constant 0 : index
    %c0_8 = arith.constant 0 : index
    %10 = vector.load %arg5[%c0_7, %c0_8] : memref<1x128xf32, #tpu.memory_space<vmem>>, vector<1x128xf32>
    %11 = vector.broadcast %10 : vector<1x128xf32> to vector<8x128xf32>
    %12 = arith.addf %9, %11 : vector<8x128xf32>
    %cst = arith.constant 0.000000e+00 : f32
    %13 = vector.broadcast %cst : f32 to vector<8x128xf32>
    %14 = arith.maximumf %12, %13 : vector<8x128xf32>
    %c0_9 = arith.constant 0 : index
    %c0_10 = arith.constant 0 : index
    %15 = vector.load %arg6[%c0_9, %c0_10] : memref<8x128xf32, #tpu.memory_space<vmem>>, vector<8x128xf32>
    tpu.vector_store %arg6[%c0_9, %c0_10], %14 {strides = array<i32>} : memref<8x128xf32, #tpu.memory_space<vmem>>, vector<8x128xf32>,
    return
  }
  func.func @transform_0(%arg0: i32) -> (i32, i32) {
    %c0_i32 = arith.constant 0 : i32
    %c0_i32_0 = arith.constant 0 : i32
    return %arg0, %c0_i32 : i32, i32
  }
  func.func @transform_1(%arg0: i32) -> (i32, i32) {
    %c0_i32 = arith.constant 0 : i32
    %c0_i32_0 = arith.constant 0 : i32
    %c0_i32_1 = arith.constant 0 : i32
    return %c0_i32, %c0_i32_0 : i32, i32
  }
  func.func @transform_2(%arg0: i32) -> (i32, i32) {
    %c0_i32 = arith.constant 0 : i32
    %c0_i32_0 = arith.constant 0 : i32
    %c0_i32_1 = arith.constant 0 : i32
    return %c0_i32, %c0_i32_0 : i32, i32
  }
  func.func @transform_3(%arg0: i32) -> (i32, i32) {
    %c0_i32 = arith.constant 0 : i32
    %c0_i32_0 = arith.constant 0 : i32
    %c0_i32_1 = arith.constant 0 : i32
    return %c0_i32, %c0_i32_0 : i32, i32
  }
  func.func @transform_4(%arg0: i32) -> (i32, i32) {
    %c0_i32 = arith.constant 0 : i32
    %c0_i32_0 = arith.constant 0 : i32
    %c0_i32_1 = arith.constant 0 : i32
    return %c0_i32, %c0_i32_0 : i32, i32
  }
  func.func @transform_5(%arg0: i32) -> (i32, i32) {
    %c0_i32 = arith.constant 0 : i32
    %c0_i32_0 = arith.constant 0 : i32
    return %arg0, %c0_i32 : i32, i32
  }
}

module attributes {stable_mosaic.version = 11 : i64} {
  func.func @_linear_stats_kernel(%arg0: i32, %arg1: memref<8x128xf32, #tpu.memory_space<vmem>>, %arg2: memref<128x128xbf16, #tpu.memory_space<vmem>>, %arg3: memref<1x128xf32, #tpu.memory_space<vmem>>, %arg4: memref<128x128xbf16, #tpu.memory_space<vmem>>, %arg5: memref<1x128xf32, #tpu.memory_space<vmem>>, %arg6: memref<8x128xf32, #tpu.memory_space<vmem>>, %arg7: memref<1x128xf32, #tpu.memory_space<vmem>>, %arg8: memref<1x128xf32, #tpu.memory_space<vmem>>, %arg9: memref<1x128xf32, #tpu.memory_space<vmem>>, %arg10: memref<1x128xf32, #tpu.memory_space<vmem>>) attributes {dimension_semantics = [#tpu.dimension_semantics<arbitrary>], iteration_bounds = array<i64: 1>, scalar_prefetch = 0 : i64, scratch_operands = 2 : i64, tpu.core_type = #tpu.core_type<tc>, window_params = [{transform_indices = @transform_0, window_bounds = array<i64: 8, 128>}, {pipeline_mode = #tpu.pipeline_mode<synchronous>, transform_indices = @transform_1, window_bounds = array<i64: 128, 128>}, {pipeline_mode = #tpu.pipeline_mode<synchronous>, transform_indices = @transform_2, window_bounds = array<i64: 1, 128>}, {pipeline_mode = #tpu.pipeline_mode<synchronous>, transform_indices = @transform_3, window_bounds = array<i64: 128, 128>}, {pipeline_mode = #tpu.pipeline_mode<synchronous>, transform_indices = @transform_4, window_bounds = array<i64: 1, 128>}, {transform_indices = @transform_5, window_bounds = array<i64: 8, 128>}, {pipeline_mode = #tpu.pipeline_mode<synchronous>, transform_indices = @transform_6, window_bounds = array<i64: 1, 128>}, {pipeline_mode = #tpu.pipeline_mode<synchronous>, transform_indices = @transform_7, window_bounds = array<i64: 1, 128>}]} {
    %c0_i32 = arith.constant 0 : i32
    %0 = arith.cmpi eq, %arg0, %c0_i32 : i32
    %1 = arith.extui %0 : i1 to i32
    %c0_i32_0 = arith.constant 0 : i32
    %2 = arith.cmpi ne, %1, %c0_i32_0 : i32
    scf.if %2 {
      %cst_26 = arith.constant 0.000000e+00 : f32
      %33 = vector.broadcast %cst_26 : f32 to vector<1x128xf32>
      %c0_27 = arith.constant 0 : index
      %c0_28 = arith.constant 0 : index
      %34 = vector.load %arg9[%c0_27, %c0_28] : memref<1x128xf32, #tpu.memory_space<vmem>>, vector<1x128xf32>
      tpu.vector_store %arg9[%c0_27, %c0_28], %33 {strides = array<i32>} : memref<1x128xf32, #tpu.memory_space<vmem>>, vector<1x128xf32>,
      %cst_29 = arith.constant 0.000000e+00 : f32
      %35 = vector.broadcast %cst_29 : f32 to vector<1x128xf32>
      %c0_30 = arith.constant 0 : index
      %c0_31 = arith.constant 0 : index
      %36 = vector.load %arg10[%c0_30, %c0_31] : memref<1x128xf32, #tpu.memory_space<vmem>>, vector<1x128xf32>
      tpu.vector_store %arg10[%c0_30, %c0_31], %35 {strides = array<i32>} : memref<1x128xf32, #tpu.memory_space<vmem>>, vector<1x128xf32>,
    } else {
    }
    %c0 = arith.constant 0 : index
    %c0_1 = arith.constant 0 : index
    %3 = vector.load %arg1[%c0, %c0_1] : memref<8x128xf32, #tpu.memory_space<vmem>>, vector<8x128xf32>
    %4 = arith.truncf %3 : vector<8x128xf32> to vector<8x128xbf16>
    %c0_2 = arith.constant 0 : index
    %c0_3 = arith.constant 0 : index
    %5 = vector.load %arg2[%c0_2, %c0_3] : memref<128x128xbf16, #tpu.memory_space<vmem>>, vector<128x128xbf16>
    %cst = arith.constant dense<0.000000e+00> : vector<8x128xf32>
    %6 = tpu.matmul %4, %5, %cst {dimension_numbers = #tpu.dot_dimension_numbers<[1], [0], [0], [1], [0, 0, 1, 1], [], []>} : vector<8x128xbf16>, vector<128x128xbf16>, vector<8x128xf32> -> vector<8x128xf32>
    %c0_4 = arith.constant 0 : index
    %c0_5 = arith.constant 0 : index
    %7 = vector.load %arg3[%c0_4, %c0_5] : memref<1x128xf32, #tpu.memory_space<vmem>>, vector<1x128xf32>
    %8 = vector.broadcast %7 : vector<1x128xf32> to vector<8x128xf32>
    %9 = arith.addf %6, %8 : vector<8x128xf32>
    %cst_6 = arith.constant 0.000000e+00 : f32
    %10 = vector.broadcast %cst_6 : f32 to vector<8x128xf32>
    %11 = arith.maximumf %9, %10 : vector<8x128xf32>
    %12 = arith.truncf %11 : vector<8x128xf32> to vector<8x128xbf16>
    %c0_7 = arith.constant 0 : index
    %c0_8 = arith.constant 0 : index
    %13 = vector.load %arg4[%c0_7, %c0_8] : memref<128x128xbf16, #tpu.memory_space<vmem>>, vector<128x128xbf16>
    %cst_9 = arith.constant dense<0.000000e+00> : vector<8x128xf32>
    %14 = tpu.matmul %12, %13, %cst_9 {dimension_numbers = #tpu.dot_dimension_numbers<[1], [0], [0], [1], [0, 0, 1, 1], [], []>} : vector<8x128xbf16>, vector<128x128xbf16>, vector<8x128xf32> -> vector<8x128xf32>
    %c0_10 = arith.constant 0 : index
    %c0_11 = arith.constant 0 : index
    %15 = vector.load %arg5[%c0_10, %c0_11] : memref<1x128xf32, #tpu.memory_space<vmem>>, vector<1x128xf32>
    %16 = vector.broadcast %15 : vector<1x128xf32> to vector<8x128xf32>
    %17 = arith.addf %14, %16 : vector<8x128xf32>
    %c0_12 = arith.constant 0 : index
    %c0_13 = arith.constant 0 : index
    %18 = vector.load %arg6[%c0_12, %c0_13] : memref<8x128xf32, #tpu.memory_space<vmem>>, vector<8x128xf32>
    tpu.vector_store %arg6[%c0_12, %c0_13], %17 {strides = array<i32>} : memref<8x128xf32, #tpu.memory_space<vmem>>, vector<8x128xf32>,
    %c0_14 = arith.constant 0 : index
    %c0_15 = arith.constant 0 : index
    %19 = vector.load %arg9[%c0_14, %c0_15] : memref<1x128xf32, #tpu.memory_space<vmem>>, vector<1x128xf32>
    %cst_16 = arith.constant dense<0.000000e+00> : vector<128xf32>
    %20 = vector.multi_reduction <add>, %17, %cst_16 [0] : vector<8x128xf32> to vector<128xf32>
    %21 = vector.shape_cast %20 : vector<128xf32> to vector<1x128xf32>
    %22 = arith.addf %19, %21 : vector<1x128xf32>
    %c0_17 = arith.constant 0 : index
    %c0_18 = arith.constant 0 : index
    %23 = vector.load %arg9[%c0_17, %c0_18] : memref<1x128xf32, #tpu.memory_space<vmem>>, vector<1x128xf32>
    tpu.vector_store %arg9[%c0_17, %c0_18], %22 {strides = array<i32>} : memref<1x128xf32, #tpu.memory_space<vmem>>, vector<1x128xf32>,
    %c0_19 = arith.constant 0 : index
    %c0_20 = arith.constant 0 : index
    %24 = vector.load %arg10[%c0_19, %c0_20] : memref<1x128xf32, #tpu.memory_space<vmem>>, vector<1x128xf32>
    %25 = arith.mulf %17, %17 : vector<8x128xf32>
    %cst_21 = arith.constant dense<0.000000e+00> : vector<128xf32>
    %26 = vector.multi_reduction <add>, %25, %cst_21 [0] : vector<8x128xf32> to vector<128xf32>
    %27 = vector.shape_cast %26 : vector<128xf32> to vector<1x128xf32>
    %28 = arith.addf %24, %27 : vector<1x128xf32>
    %c0_22 = arith.constant 0 : index
    %c0_23 = arith.constant 0 : index
    %29 = vector.load %arg10[%c0_22, %c0_23] : memref<1x128xf32, #tpu.memory_space<vmem>>, vector<1x128xf32>
    tpu.vector_store %arg10[%c0_22, %c0_23], %28 {strides = array<i32>} : memref<1x128xf32, #tpu.memory_space<vmem>>, vector<1x128xf32>,
    %c0_i32_24 = arith.constant 0 : i32
    %30 = arith.cmpi eq, %arg0, %c0_i32_24 : i32
    %31 = arith.extui %30 : i1 to i32
    %c0_i32_25 = arith.constant 0 : i32
    %32 = arith.cmpi ne, %31, %c0_i32_25 : i32
    scf.if %32 {
      %c0_26 = arith.constant 0 : index
      %c0_27 = arith.constant 0 : index
      %33 = vector.load %arg9[%c0_26, %c0_27] : memref<1x128xf32, #tpu.memory_space<vmem>>, vector<1x128xf32>
      %cst_28 = arith.constant 8.000000e+00 : f32
      %34 = vector.broadcast %cst_28 : f32 to vector<1x128xf32>
      %35 = arith.divf %33, %34 : vector<1x128xf32>
      %c0_29 = arith.constant 0 : index
      %c0_30 = arith.constant 0 : index
      %36 = vector.load %arg10[%c0_29, %c0_30] : memref<1x128xf32, #tpu.memory_space<vmem>>, vector<1x128xf32>
      %cst_31 = arith.constant 8.000000e+00 : f32
      %37 = vector.broadcast %cst_31 : f32 to vector<1x128xf32>
      %38 = arith.divf %36, %37 : vector<1x128xf32>
      %39 = arith.mulf %35, %35 : vector<1x128xf32>
      %40 = arith.subf %38, %39 : vector<1x128xf32>
      %c0_32 = arith.constant 0 : index
      %c0_33 = arith.constant 0 : index
      %41 = vector.load %arg7[%c0_32, %c0_33] : memref<1x128xf32, #tpu.memory_space<vmem>>, vector<1x128xf32>
      tpu.vector_store %arg7[%c0_32, %c0_33], %35 {strides = array<i32>} : memref<1x128xf32, #tpu.memory_space<vmem>>, vector<1x128xf32>,
      %cst_34 = arith.constant 9.99999974E-6 : f32
      %42 = vector.broadcast %cst_34 : f32 to vector<1x128xf32>
      %43 = arith.addf %40, %42 : vector<1x128xf32>
      %44 = math.rsqrt %43 : vector<1x128xf32>
      %c0_35 = arith.constant 0 : index
      %c0_36 = arith.constant 0 : index
      %45 = vector.load %arg8[%c0_35, %c0_36] : memref<1x128xf32, #tpu.memory_space<vmem>>, vector<1x128xf32>
      tpu.vector_store %arg8[%c0_35, %c0_36], %44 {strides = array<i32>} : memref<1x128xf32, #tpu.memory_space<vmem>>, vector<1x128xf32>,
    } else {
    }
    return
  }
  func.func @transform_0(%arg0: i32) -> (i32, i32) {
    %c0_i32 = arith.constant 0 : i32
    %c0_i32_0 = arith.constant 0 : i32
    return %arg0, %c0_i32 : i32, i32
  }
  func.func @transform_1(%arg0: i32) -> (i32, i32) {
    %c0_i32 = arith.constant 0 : i32
    %c0_i32_0 = arith.constant 0 : i32
    %c0_i32_1 = arith.constant 0 : i32
    return %c0_i32, %c0_i32_0 : i32, i32
  }
  func.func @transform_2(%arg0: i32) -> (i32, i32) {
    %c0_i32 = arith.constant 0 : i32
    %c0_i32_0 = arith.constant 0 : i32
    %c0_i32_1 = arith.constant 0 : i32
    return %c0_i32, %c0_i32_0 : i32, i32
  }
  func.func @transform_3(%arg0: i32) -> (i32, i32) {
    %c0_i32 = arith.constant 0 : i32
    %c0_i32_0 = arith.constant 0 : i32
    %c0_i32_1 = arith.constant 0 : i32
    return %c0_i32, %c0_i32_0 : i32, i32
  }
  func.func @transform_4(%arg0: i32) -> (i32, i32) {
    %c0_i32 = arith.constant 0 : i32
    %c0_i32_0 = arith.constant 0 : i32
    %c0_i32_1 = arith.constant 0 : i32
    return %c0_i32, %c0_i32_0 : i32, i32
  }
  func.func @transform_5(%arg0: i32) -> (i32, i32) {
    %c0_i32 = arith.constant 0 : i32
    %c0_i32_0 = arith.constant 0 : i32
    return %arg0, %c0_i32 : i32, i32
  }
  func.func @transform_6(%arg0: i32) -> (i32, i32) {
    %c0_i32 = arith.constant 0 : i32
    %c0_i32_0 = arith.constant 0 : i32
    %c0_i32_1 = arith.constant 0 : i32
    return %c0_i32, %c0_i32_0 : i32, i32
  }
  func.func @transform_7(%arg0: i32) -> (i32, i32) {
    %c0_i32 = arith.constant 0 : i32
    %c0_i32_0 = arith.constant 0 : i32
    %c0_i32_1 = arith.constant 0 : i32
    return %c0_i32, %c0_i32_0 : i32, i32
  }
}

</mosaic_0001>

<bundles_post_ra>
// kernel: mlp_forward.3
= control target key start
LH: loop header
LB: loop body
LE: loop exit
PB: predicated region body
PF: predicated region fallthrough
CT: control target
= control target key end

     0   :  { %s157_s0 = inlined_call_operand.vmem [shape: f32[8,128], index: 0, kind: input, shape index: {}]   ;;  %s158_s1 = inlined_call_operand.vmem [shape: f32[1,128], index: 1, kind: input, shape index: {}]   ;;  %s159_s2 = inlined_call_operand.vmem [shape: f32[1,128], index: 2, kind: input, shape index: {}]   ;;  %s160_s3 = inlined_call_operand.vmem [shape: f32[1,128], index: 3, kind: input, shape index: {}]   ;;  %s161_s4 = inlined_call_operand.vmem [shape: f32[1,128], index: 4, kind: input, shape index: {}]   ;;  %s162_s5 = inlined_call_operand.hbm [shape: f32[8,128], index: 5, kind: output, shape index: {}]  }
   0x1   :  { %v21_v0 = vld [vmem:[%s157_s0] sm:$0xff] }
   0x2   :  { %v70_v1 = vld [vmem:[%s158_s1] ss:$0 sm:$0xff] }
   0x3   :  { %v71_v2 = vld [vmem:[%s159_s2] ss:$0 sm:$0xff]  ;;  %v29_v3 = vsub.f32 %v21_v0, %v70_v1 }
   0x4   :  { %10 = vsyncpa [#allocation3], 0  ;;  %v72_v4 = vld [vmem:[%s160_s3] ss:$0 sm:$0xff]  ;;  %s99_s0 = smov [#allocation2]  }
   0x5   :  { %v37_v5 = vmul.f32 %v71_v2, %v29_v3  ;;  %v73_v6 = vld [vmem:[%s161_s4] ss:$0 sm:$0xff]  ;;  %s62_s28 = sshll.u32 %s99_s0, 4  ;;  %s63_s28 = int_to_ptr.vmem [resolvable:$true] %s62_s28 }
   0x6   :  { %s75_s1 = scalar_lea.vmem %s63_s28, 128  ;;  %p80_p1 = scmp.lt.s32.totalorder %s63_s28, %s63_s28 }
   0x7   :  { %v45_v7 = vmul.f32 %v72_v4, %v37_v5  ;;  %p76_p0 = scmp.ne.s32.totalorder %s63_s28, %s75_s1  ;;  %p81_p2 = scmp.lt.s32.totalorder %s75_s1, %s75_s1 }
   0x9   :  { %v53_v8 = vadd.f32 %v73_v6, %v45_v7  ;;  %p82_p3 = por %p81_p2, %p80_p1 }
   0xb   :  { %v54_v9 = vmax.f32 %v53_v8, 0.0  ;;  %p83_p4 = pnand %p82_p3, %p76_p0 }
   0xd   :  { %55 = vst [vmem:[#allocation2] sm:$0xff] %v54_v9 }
   0xe   :  { %86 = shalt.err (!%p83_p4)
}
   0xf   :  { %s87_s29 = scalar_lea.hbm %s162_s5, 128 }
  0x10   :  { %p88_p5 = scmp.ne.s32.totalorder %s162_s5, %s87_s29  ;;  %p91_p6 = scmp.lt.u32.totalorder %s87_s29, %s162_s5 }
  0x12   :  { %p93_p7 = pnand %p91_p6, %p88_p5 }
  0x14   :  { %96 = shalt.err (!%p93_p7)
}
  0x15   :  { %65 = dma.vmem_to_hbm [thread:$0]  %s63_s28, 128, %s162_s5, [#allocation3]  }
  0x16   :  { %97 = dma.done.wait [#allocation3], 128  }
  0x17   :  { %98 = vsyncadd [#allocation3], 4294967168 }
  0x18   :  { %69 = vsyncpa [#allocation3], 1 }

// kernel: mlp_forward.2
= control target key start
LH: loop header
LB: loop body
LE: loop exit
PB: predicated region body
PF: predicated region fallthrough
CT: control target
= control target key end

     0   :  { %v398_v0 = vmov 0.0   ;;  %vm399_vm0 = vmmov 0   ;;  %s506_s1 = inlined_call_operand.vmem [shape: bf16[128,128], index: 1, kind: input, shape index: {}]   ;;  %s507_s3 = inlined_call_operand.vmem [shape: bf16[128,128], index: 3, kind: input, shape index: {}]   ;;  %s508_s0 = inlined_call_operand.vmem [shape: f32[8,128], index: 0, kind: input, shape index: {}]   ;;  %s509_s2 = inlined_call_operand.vmem [shape: f32[1,128], index: 2, kind: input, shape index: {}]   ;;  %s510_s4 = inlined_call_operand.vmem [shape: f32[1,128], index: 4, kind: input, shape index: {}]   ;;  %s511_s5 = inlined_call_operand.vmem [shape: f32[8,128], index: 5, kind: output, shape index: {0}]   ;;  %s512_s6 = inlined_call_operand.vmem [shape: f32[1,128], index: 6, kind: output, shape index: {1}]   ;;  %s513_s7 = inlined_call_operand.vmem [shape: f32[1,128], index: 7, kind: output, shape index: {2}]  }
   0x1   :  { %338 = vmatprep.subr.bf16.mxu0 %v398_v0  ;;  %28 = vst [vmem:[#allocation2] sm:$0x1] %v398_v0  ;;  %29 = vst [vmem:[#allocation3] sm:$0x1] %v398_v0  ;;  %v380_v1 = vld [vmem:[%s506_s1] sm:$0xff]   ;;  %354 = vmatprep.mubr.msk.bf16.mxu0 %vm399_vm0, %v398_v0  ;;  %v381_v2 = vld [vmem:[%s506_s1 + $0x8] sm:$0xff]  }
   0x2   :  { %358 = vmatprep.subr.bf16.mxu1 %v398_v0  ;;  %374 = vmatprep.mubr.msk.bf16.mxu1 %vm399_vm0, %v398_v0  ;;  %v382_v3 = vld [vmem:[%s506_s1 + $0x10] sm:$0xff]   ;;  %v388_v4 = vld [vmem:[%s507_s3] sm:$0xff]   ;;  %v383_v5 = vld [vmem:[%s506_s1 + $0x18] sm:$0xff]  }
   0x3   :  { %339 = vmatpush3.bf16.msra.mxu0 %v380_v1  ;;  %359 = vmatpush3.bf16.msra.mxu1 %v388_v4  ;;  %v389_v6 = vld [vmem:[%s507_s3 + $0x8] sm:$0xff]   ;;  %v384_v7 = vld [vmem:[%s506_s1 + $0x20] sm:$0xff]   ;;  %v390_v8 = vld [vmem:[%s507_s3 + $0x10] sm:$0xff]  }
   0x4   :  { %340 = vmatprep.subr.bf16.mxu0 %v398_v0  ;;  %360 = vmatprep.subr.bf16.mxu1 %v398_v0  ;;  %v385_v9 = vld [vmem:[%s506_s1 + $0x28] sm:$0xff]   ;;  %v391_v10 = vld [vmem:[%s507_s3 + $0x18] sm:$0xff]   ;;  %v386_v11 = vld [vmem:[%s506_s1 + $0x30] sm:$0xff]  }
   0x5   :  { %v392_v12 = vld [vmem:[%s507_s3 + $0x20] sm:$0xff]   ;;  %v387_v13 = vld [vmem:[%s506_s1 + $0x38] sm:$0xff]   ;;  %v393_v15 = vld [vmem:[%s507_s3 + $0x28] sm:$0xff]  }
   0x6   :  { %v30_v14 = vld [vmem:[%s508_s0] sm:$0xff]  ;;  %v394_v17 = vld [vmem:[%s507_s3 + $0x30] sm:$0xff]   ;;  %v395_v18 = vld [vmem:[%s507_s3 + $0x38] sm:$0xff]  }
   0x7   :  { %341 = vmatpush3.bf16.msra.mxu0 %v381_v2  ;;  %361 = vmatpush3.bf16.msra.mxu1 %v389_v6  ;;  %v31_v16 = vpack.c.bf16 %v30_v14, %v30_v14  ;;  %v302_v19 = vld [vmem:[%s509_s2] ss:$0 sm:$0xff] }
   0x8   :  { %342 = vmatprep.subr.bf16.mxu0 %v398_v0  ;;  %362 = vmatprep.subr.bf16.mxu1 %v398_v0  ;;  %v311_v27 = vld [vmem:[%s510_s4] ss:$0 sm:$0xff]  ;;  %v266_v46 = vld [vmem:[#allocation3] sm:$0x1] }
   0x9   :  { %v257_v43 = vld [vmem:[#allocation2] sm:$0x1] }
   0xb   :  { %343 = vmatpush3.bf16.msra.mxu0 %v382_v3  ;;  %363 = vmatpush3.bf16.msra.mxu1 %v390_v8 }
   0xc   :  { %344 = vmatprep.subr.bf16.mxu0 %v398_v0  ;;  %364 = vmatprep.subr.bf16.mxu1 %v398_v0 }
   0xf   :  { %345 = vmatpush3.bf16.msra.mxu0 %v383_v5  ;;  %365 = vmatpush3.bf16.msra.mxu1 %v391_v10 }
  0x10   :  { %346 = vmatprep.subr.bf16.mxu0 %v398_v0  ;;  %366 = vmatprep.subr.bf16.mxu1 %v398_v0 }
  0x13   :  { %347 = vmatpush3.bf16.msra.mxu0 %v384_v7  ;;  %367 = vmatpush3.bf16.msra.mxu1 %v392_v12 }
  0x14   :  { %348 = vmatprep.subr.bf16.mxu0 %v398_v0  ;;  %368 = vmatprep.subr.bf16.mxu1 %v398_v0 }
  0x17   :  { %349 = vmatpush3.bf16.msra.mxu0 %v385_v9  ;;  %369 = vmatpush3.bf16.msra.mxu1 %v393_v15 }
  0x18   :  { %350 = vmatprep.subr.bf16.mxu0 %v398_v0  ;;  %370 = vmatprep.subr.bf16.mxu1 %v398_v0 }
  0x1b   :  { %351 = vmatpush3.bf16.msra.mxu0 %v386_v11  ;;  %371 = vmatpush3.bf16.msra.mxu1 %v394_v17 }
  0x1c   :  { %352 = vmatprep.subr.bf16.mxu0 %v398_v0  ;;  %372 = vmatprep.subr.bf16.mxu1 %v398_v0 }
  0x1f   :  { %353 = vmatpush3.bf16.msra.mxu0 %v387_v13  ;;  %373 = vmatpush3.bf16.msra.mxu1 %v395_v18 }
  0x22   :  { %355 = vmatmul.mubr.bf16.vlgmr.msra.gmra.mrb[0].mxu0 %v31_v16 }
  0xf5   :  { %v137_v20 = vpop.f32.mrb[0].mxu0 }
  0xf6   :  { %v138_v21 = vadd.f32 %v302_v19, %v137_v20  ;;  %v356_v22 = vpop.f32.mrb[1].mxu0 }
  0xf7   :  { %v140_v23 = vpop.f32.mrb[2].mxu0 }
  0xf8   :  { %v143_v24 = vmax.f32 %v138_v21, 0.0  ;;  %v357_v25 = vpop.f32.mrb[3].mxu0 }
  0xfa   :  { %v144_v26 = vpack.c.bf16 %v143_v24, %v143_v24 }
  0xfc   :  { %375 = vmatmul.mubr.bf16.vlgmr.msra.gmra.mrb[0].mxu1 %v144_v26 }
 0x1cf   :  { %v250_v28 = vpop.f32.mrb[0].mxu1 }
 0x1d0   :  { %v251_v29 = vadd.f32 %v311_v27, %v250_v28  ;;  %v376_v30 = vpop.f32.mrb[1].mxu1 }
 0x1d1   :  { %v253_v31 = vpop.f32.mrb[2].mxu1 }
 0x1d2   :  { %256 = vst [vmem:[%s511_s5] sm:$0xff] %v251_v29  ;;  %v258_v32 = vrot.slane %v251_v29, 4  ;;  %v267_v33 = vmul.f32 %v251_v29, %v251_v29  ;;  %v377_v34 = vpop.f32.mrb[3].mxu1 }
 0x1d4   :  { %v259_v35 = vadd.f32 %v258_v32, %v251_v29  ;;  %v268_v36 = vrot.slane %v267_v33, 4 }
 0x1d6   :  { %v260_v37 = vrot.slane %v259_v35, 2  ;;  %v269_v38 = vadd.f32 %v268_v36, %v267_v33 }
 0x1d8   :  { %v261_v39 = vadd.f32 %v260_v37, %v259_v35  ;;  %v270_v40 = vrot.slane %v269_v38, 2 }
 0x1da   :  { %v262_v41 = vrot.slane %v261_v39, 1  ;;  %v271_v42 = vadd.f32 %v270_v40, %v269_v38 }
 0x1dc   :  { %v263_v44 = vadd.f32 %v262_v41, %v261_v39  ;;  %v272_v45 = vrot.slane %v271_v42, 1 }
 0x1de   :  { %v264_v47 = vadd.f32 %v263_v44, %v257_v43  ;;  %v273_v48 = vadd.f32 %v272_v45, %v271_v42 }
 0x1e0   :  { %265 = vst [vmem:[#allocation2] sm:$0x1] %v264_v47  ;;  %v274_v49 = vadd.f32 %v273_v48, %v266_v46 }
 0x1e2   :  { %275 = vst [vmem:[#allocation3] sm:$0x1] %v274_v49 }
 0x1e7   :  { %v279_v50 = vld [vmem:[#allocation2] sm:$0x1] }
 0x1e8   :  { %v281_v51 = vmul.f32 0.125, %v279_v50 }
 0x1e9   :  { %v282_v52 = vld [vmem:[#allocation3] sm:$0x1] }
 0x1ea   :  { %v283_v53 = vmul.f32 0.125, %v282_v52  ;;  %v284_v54 = vmul.f32 %v281_v51, %v281_v51  ;;  %286 = vst [vmem:[%s512_s6] sm:$0x1] %v281_v51 }
 0x1ec   :  { %v285_v55 = vsub.f32 %v283_v53, %v284_v54 }
 0x1ee   :  { %v287_v56 = vadd.f32 1e-05, %v285_v55 }
 0x1f0   :  { %396 = vrsqrt.f32 %v287_v56 }
 0x1fa   :  { %v397_v57 = vpop.eup %396 }
 0x1fb   :  { %289 = vst [vmem:[%s513_s7] sm:$0x1] %v397_v57 }

</bundles_post_ra>
